<compile_context>
chip_gen: v7x
topology: tpu7x:2x2x1
jax: 0.10.0
libtpu: 0.0.40
codegen_flags: <defaults>
</compile_context>

<pallas_src>
import functools

import jax
import jax.numpy as jnp
from jax.experimental import pallas as pl
from jax.experimental.pallas import tpu as pltpu

F_IN, F_HID, F_OUT = 7, 16, 4
LANE = 128


def _segment_mlp_kernel(xt_ref, w1t_ref, b1t_ref, w2t_ref, b2t_ref, o_ref):
    # xt_ref:  [7,  TILE_N]   (features on sublanes, batch on lanes)
    # w1t_ref: [16, 7], b1t_ref: [16, 1]
    # w2t_ref: [4, 16], b2t_ref: [4, 1]
    # o_ref:   [4,  TILE_N]
    x = xt_ref[...]
    # layer1: relu(W1ᵀ @ x + b1)            ([16,7] @ [7,T] = [16,T])
    h = jnp.dot(w1t_ref[...], x, preferred_element_type=jnp.float32)
    h = jnp.maximum(h + b1t_ref[...], 0.0)
    # layer2: sigmoid(W2ᵀ @ h + b2)         ([4,16] @ [16,T] = [4,T])
    y = jnp.dot(w2t_ref[...], h, preferred_element_type=jnp.float32)
    y = y + b2t_ref[...]
    # Kernel is HBM-bound: sigmoid's exp sits on the EUP slot and is hidden
    # under the DMA stream, so the approx-reciprocal rewrite buys nothing and
    # exact sigmoid keeps parity with the reference within 1e-5.
    o_ref[...] = jax.nn.sigmoid(y).astype(o_ref.dtype)


def _round_up(a, b):
    return ((a + b - 1) // b) * b


def _pick_tile_n(n_pad):
    """Per-generation TILE_N: amortize the ~0.35us/step overhead while fitting
    the default scoped-VMEM limit (~224 B/column: 2x in + 2x out buffers +
    h/y temporaries)."""
    try:
        kind = jax.devices()[0].device_kind.lower()
    except Exception:
        kind = ""
    if "v6" in kind or "v7" in kind:
        cap = 65536       # ~14 MiB footprint, fits the 32 MiB default scoped VMEM
    else:
        cap = 32768       # v5e-safe: ~7 MiB, under its 16 MiB default
    tile = min(cap, n_pad)
    # v7x has 2 TensorCores: with enough work, keep >=4 grid steps so the
    # "parallel" grid axis can actually shard across both cores.
    if "v7" in kind and n_pad >= 4 * 32768:
        tile = min(tile, _round_up(pl.cdiv(n_pad, 4), LANE))
    return max(LANE, _round_up(tile, LANE))


def segment_mlp_feature_major(xt, w1t, b1c, w2t, b2c, *, tile_n=None):
    """Feature-major core: xt [7, Np] (Np a multiple of 128) -> [4, Np].

    Preferred entry point when the caller controls the layout: no transposes,
    no padding passes — just the streaming kernel.
    """
    f_in, n_pad = xt.shape
    assert f_in == F_IN and n_pad % LANE == 0, (xt.shape,)
    if tile_n is None:
        tile_n = _pick_tile_n(n_pad)
    tile_n = max(LANE, min(_round_up(tile_n, LANE), n_pad))
    # cdiv grid: a possibly-uneven final tile stays 128-lane aligned; its
    # out-of-range columns are masked on writeback and sliced off by callers.
    grid = pl.cdiv(n_pad, tile_n)

    return pl.pallas_call(
        _segment_mlp_kernel,
        out_shape=jax.ShapeDtypeStruct((F_OUT, n_pad), xt.dtype),
        grid=(grid,),
        in_specs=[
            pl.BlockSpec((F_IN, tile_n), lambda i: (0, i)),   # x tile (streamed)
            pl.BlockSpec((F_HID, F_IN), lambda i: (0, 0)),    # W1ᵀ (VMEM-resident)
            pl.BlockSpec((F_HID, 1), lambda i: (0, 0)),       # b1
            pl.BlockSpec((F_OUT, F_HID), lambda i: (0, 0)),   # W2ᵀ (VMEM-resident)
            pl.BlockSpec((F_OUT, 1), lambda i: (0, 0)),       # b2
        ],
        out_specs=pl.BlockSpec((F_OUT, tile_n), lambda i: (0, i)),
        compiler_params=pltpu.CompilerParams(
            dimension_semantics=("parallel",),
        ),
        cost_estimate=pl.CostEstimate(
            flops=(2 * F_IN * F_HID + 2 * F_HID * F_OUT) * n_pad,   # 352 flop/col
            transcendentals=F_OUT * n_pad,                          # sigmoid exps
            bytes_accessed=(F_IN + F_OUT) * 4 * n_pad
            + 4 * (F_IN * F_HID + F_HID + F_HID * F_OUT + F_OUT),
        ),
    )(xt, w1t, b1c, w2t, b2c)


@functools.partial(jax.jit, static_argnames=("tile_n",))
def segment_model_forward(x, w1, b1, w2, b2, tile_n=None):
    """PyTorch-layout adapter: x [N,7] f32 -> [N,4] f32.

    Layout plumbing is done once and fused under jit: pad N only up to the next
    multiple of 128 lanes and transpose (one copy), run the feature-major core,
    then one cheap (16 B/row) transpose back to [N,4].
    """
    n, f_in = x.shape
    assert f_in == F_IN, x.shape

    n_pad = _round_up(max(n, LANE), LANE)
    x_pad = jnp.pad(x, ((0, n_pad - n), (0, 0))) if n_pad != n else x
    xt = x_pad.T                   # [7, n_pad]  feature-major (fused pad+transpose)
    w1t = w1.T                     # [16, 7]
    w2t = w2.T                     # [4, 16]
    b1c = b1.reshape(F_HID, 1)     # [16, 1]
    b2c = b2.reshape(F_OUT, 1)     # [4, 1]

    out_t = segment_mlp_feature_major(xt, w1t, b1c, w2t, b2c, tile_n=tile_n)

    # Callers that can stay feature-major should call segment_mlp_feature_major
    # directly and skip this final transpose pass.
    return out_t[:, :n].T          # [N, 4]


def init_params(key):
    """Deterministic synthetic parameters matching nn.Linear(7,16)/(16,4)."""
    k1, k2, k3, k4 = jax.random.split(key, 4)
    # Stored as [in, out] so the reference computes x @ W + b.
    w1 = jax.random.uniform(k1, (7, 16), jnp.float32, -0.3, 0.3)
    b1 = jax.random.uniform(k2, (1, 16), jnp.float32, -0.3, 0.3)
    w2 = jax.random.uniform(k3, (16, 4), jnp.float32, -0.25, 0.25)
    b2 = jax.random.uniform(k4, (1, 4), jnp.float32, -0.25, 0.25)
    return w1, b1, w2, b2


def reference_forward(x, w1, b1, w2, b2):
    h = jnp.maximum(x @ w1 + b1, 0.0)
    return jax.nn.sigmoid(h @ w2 + b2)


if __name__ == "__main__":
    key = jax.random.PRNGKey(0)
    kx, kp = jax.random.split(key)

    batch = 8
    x = jax.random.normal(kx, (batch, 7), jnp.float32)
    w1, b1, w2, b2 = init_params(kp)

    out = segment_model_forward(x, w1, b1, w2, b2)
    out = jax.block_until_ready(out)

    ref = reference_forward(x, w1, b1, w2, b2)
    assert out.shape == (batch, 4), out.shape
    assert jnp.allclose(out, ref, atol=1e-5, rtol=1e-5), (
        float(jnp.max(jnp.abs(out - ref)))
    )

    print("KERNEL_OK")
</pallas_src>

<mosaic_0001>
module attributes {stable_mosaic.version = 11 : i64} {
  func.func @_segment_mlp_kernel(%arg0: i32, %arg1: memref<7x128xf32, #tpu.memory_space<vmem>>, %arg2: memref<16x7xf32, #tpu.memory_space<vmem>>, %arg3: memref<16x1xf32, #tpu.memory_space<vmem>>, %arg4: memref<4x16xf32, #tpu.memory_space<vmem>>, %arg5: memref<4x1xf32, #tpu.memory_space<vmem>>, %arg6: memref<4x128xf32, #tpu.memory_space<vmem>>) attributes {dimension_semantics = [#tpu.dimension_semantics<parallel>], iteration_bounds = array<i64: 1>, scalar_prefetch = 0 : i64, scratch_operands = 0 : i64, tpu.core_type = #tpu.core_type<tc>, window_params = [{transform_indices = @transform_0, window_bounds = array<i64: 7, 128>}, {pipeline_mode = #tpu.pipeline_mode<synchronous>, transform_indices = @transform_1, window_bounds = array<i64: 16, 7>}, {pipeline_mode = #tpu.pipeline_mode<synchronous>, transform_indices = @transform_2, window_bounds = array<i64: 16, 1>}, {pipeline_mode = #tpu.pipeline_mode<synchronous>, transform_indices = @transform_3, window_bounds = array<i64: 4, 16>}, {pipeline_mode = #tpu.pipeline_mode<synchronous>, transform_indices = @transform_4, window_bounds = array<i64: 4, 1>}, {transform_indices = @transform_5, window_bounds = array<i64: 4, 128>}]} {
    %c0 = arith.constant 0 : index
    %c0_0 = arith.constant 0 : index
    %0 = vector.load %arg1[%c0, %c0_0] : memref<7x128xf32, #tpu.memory_space<vmem>>, vector<7x128xf32>
    %c0_1 = arith.constant 0 : index
    %c0_2 = arith.constant 0 : index
    %1 = vector.load %arg2[%c0_1, %c0_2] : memref<16x7xf32, #tpu.memory_space<vmem>>, vector<16x7xf32>
    %cst = arith.constant dense<0.000000e+00> : vector<16x128xf32>
    %2 = tpu.matmul %1, %0, %cst {dimension_numbers = #tpu.dot_dimension_numbers<[1], [0], [0], [1], [0, 0, 1, 1], [], []>} : vector<16x7xf32>, vector<7x128xf32>, vector<16x128xf32> -> vector<16x128xf32>
    %c0_3 = arith.constant 0 : index
    %c0_4 = arith.constant 0 : index
    %3 = vector.load %arg3[%c0_3, %c0_4] : memref<16x1xf32, #tpu.memory_space<vmem>>, vector<16x1xf32>
    %4 = vector.broadcast %3 : vector<16x1xf32> to vector<16x128xf32>
    %5 = arith.addf %2, %4 : vector<16x128xf32>
    %cst_5 = arith.constant 0.000000e+00 : f32
    %6 = vector.broadcast %cst_5 : f32 to vector<16x128xf32>
    %7 = arith.maximumf %5, %6 : vector<16x128xf32>
    %c0_6 = arith.constant 0 : index
    %c0_7 = arith.constant 0 : index
    %8 = vector.load %arg4[%c0_6, %c0_7] : memref<4x16xf32, #tpu.memory_space<vmem>>, vector<4x16xf32>
    %cst_8 = arith.constant dense<0.000000e+00> : vector<4x128xf32>
    %9 = tpu.matmul %8, %7, %cst_8 {dimension_numbers = #tpu.dot_dimension_numbers<[1], [0], [0], [1], [0, 0, 1, 1], [], []>} : vector<4x16xf32>, vector<16x128xf32>, vector<4x128xf32> -> vector<4x128xf32>
    %c0_9 = arith.constant 0 : index
    %c0_10 = arith.constant 0 : index
    %10 = vector.load %arg5[%c0_9, %c0_10] : memref<4x1xf32, #tpu.memory_space<vmem>>, vector<4x1xf32>
    %11 = vector.broadcast %10 : vector<4x1xf32> to vector<4x128xf32>
    %12 = arith.addf %9, %11 : vector<4x128xf32>
    %13 = arith.negf %12 : vector<4x128xf32>
    %14 = math.exp %13 : vector<4x128xf32>
    %cst_11 = arith.constant 1.000000e+00 : f32
    %15 = vector.broadcast %cst_11 : f32 to vector<4x128xf32>
    %16 = arith.addf %15, %14 : vector<4x128xf32>
    %17 = arith.divf %15, %16 : vector<4x128xf32>
    %c0_12 = arith.constant 0 : index
    %c0_13 = arith.constant 0 : index
    %18 = vector.load %arg6[%c0_12, %c0_13] : memref<4x128xf32, #tpu.memory_space<vmem>>, vector<4x128xf32>
    tpu.vector_store %arg6[%c0_12, %c0_13], %17 {strides = array<i32>} : memref<4x128xf32, #tpu.memory_space<vmem>>, vector<4x128xf32>,
    return
  }
  func.func @transform_0(%arg0: i32) -> (i32, i32) {
    %c0_i32 = arith.constant 0 : i32
    %c0_i32_0 = arith.constant 0 : i32
    return %c0_i32, %arg0 : i32, i32
  }
  func.func @transform_1(%arg0: i32) -> (i32, i32) {
    %c0_i32 = arith.constant 0 : i32
    %c0_i32_0 = arith.constant 0 : i32
    %c0_i32_1 = arith.constant 0 : i32
    return %c0_i32, %c0_i32_0 : i32, i32
  }
  func.func @transform_2(%arg0: i32) -> (i32, i32) {
    %c0_i32 = arith.constant 0 : i32
    %c0_i32_0 = arith.constant 0 : i32
    %c0_i32_1 = arith.constant 0 : i32
    return %c0_i32, %c0_i32_0 : i32, i32
  }
  func.func @transform_3(%arg0: i32) -> (i32, i32) {
    %c0_i32 = arith.constant 0 : i32
    %c0_i32_0 = arith.constant 0 : i32
    %c0_i32_1 = arith.constant 0 : i32
    return %c0_i32, %c0_i32_0 : i32, i32
  }
  func.func @transform_4(%arg0: i32) -> (i32, i32) {
    %c0_i32 = arith.constant 0 : i32
    %c0_i32_0 = arith.constant 0 : i32
    %c0_i32_1 = arith.constant 0 : i32
    return %c0_i32, %c0_i32_0 : i32, i32
  }
  func.func @transform_5(%arg0: i32) -> (i32, i32) {
    %c0_i32 = arith.constant 0 : i32
    %c0_i32_0 = arith.constant 0 : i32
    return %c0_i32, %arg0 : i32, i32
  }
}

</mosaic_0001>

<bundles_post_ra>
// kernel: segment_model_forward.1
= control target key start
LH: loop header
LB: loop body
LE: loop exit
PB: predicated region body
PF: predicated region fallthrough
CT: control target
= control target key end

     0   :  { %vm42_vm0 = vcmask 1046528   ;;  %vm35_vm1 = vcmask 56320   ;;  %v251_v3 = vmov 0   ;;  %v252_v6 = vmov 0.0|0.0   ;;  %s309_s0 = inlined_call_operand.vmem [shape: f32[7,128], index: 0, kind: input, shape index: {}]   ;;  %s310_s1 = inlined_call_operand.vmem [shape: f32[16,7], index: 1, kind: input, shape index: {}]   ;;  %s311_s2 = inlined_call_operand.vmem [shape: f32[16,1], index: 2, kind: input, shape index: {}]   ;;  %s312_s4 = inlined_call_operand.vmem [shape: f32[4,1], index: 4, kind: input, shape index: {}]   ;;  %s313_s3 = inlined_call_operand.vmem [shape: f32[4,16], index: 3, kind: input, shape index: {}]   ;;  %s314_s5 = inlined_call_operand.vmem [shape: f32[4,128], index: 5, kind: output, shape index: {}]  }
   0x1   :  { %v20_v0 = vld [vmem:[%s309_s0] sm:$0x7f]  ;;  %v22_v2 = vld [vmem:[%s310_s1 + $0x8] sm:$0xff]  ;;  %245 = vset.pattern.permute.xlu0 %v251_v3  ;;  %246 = vset.pattern.permute.xlu1 %v251_v3  ;;  %vm253_vm2 = vmmov 0   ;;  %v254_v7 = vmov 0.0   ;;  %vm130_vm3 = vcmask 130048  }
   0x2   :  { %v21_v1 = vld [vmem:[%s310_s1] sm:$0xff]  ;;  %226 = vmatprep.subr.msk.mxu0 %vm42_vm0, %v20_v0  ;;  %v24_v5 = vld [vmem:[%s311_s2 + $0x8] sm:$0xff]  ;;  %238 = vmatprep.subr.bf16.mxu1 %v252_v6 }
   0x3   :  { %228 = vmatprep.mubr.msk.f32.mxu0 %vm35_vm1, %v21_v1  ;;  %v23_v4 = vld [vmem:[%s311_s2] sm:$0xff]  ;;  %227 = vmatpush3.msk.msra.mxu0 %vm42_vm0, %v20_v0 }
   0x4   :  { %27 = vperm.xlu0 %245, %v23_v4   ;;  %229 = vmatmul.mubr.msk.f32.vlgmr.msra.gmra.mrb[0].mxu0 %vm35_vm1, %v22_v2  ;;  %v124_v8 = vld [vmem:[%s312_s4] sm:$0xf] }
   0x5   :  { %235 = vmatprep.mubr.msk.f32.mxu1 %vm253_vm2, %v254_v7  ;;  %127 = vperm.xlu1 %246, %v124_v8   ;;  %v123_v18 = vld [vmem:[%s313_s3] sm:$0xf] }
   0x8   :  { %32 = vperm.xlu0 %245, %v24_v5  }
  0x83   :  { %v28_v9 = vpop.permute.xlu0 %27 }
  0x84   :  { %v128_v19 = vpop.permute.xlu1 %127 }
  0x87   :  { %v33_v10 = vpop.permute.xlu0 %32 }
  0xd7   :  { %v230_v11 = vpop.f32.mrb[0].mxu0 }
  0xd8   :  { %v118_v12 = vadd.f32 %v230_v11, %v33_v10  ;;  %v112_v13 = vpop.f32.mrb[1].mxu0 }
  0xd9   :  { %v113_v14 = vadd.f32 %v112_v13, %v28_v9 }
  0xda   :  { %v122_v15 = vmax.f32 %v118_v12, 0.0 }
  0xdb   :  { %v121_v16 = vmax.f32 %v113_v14, 0.0 }
  0xdd   :  { %v239_v17 = vpack.c.bf16 %v122_v15, %v121_v16 }
  0xdf   :  { %240 = vmatpush3.bf16.msra.mxu1 %v239_v17 }
  0xe2   :  { %236 = vmatmul.mubr.msk.f32.vlgmr.msra.gmra.mrb[0].mxu1 %vm130_vm3, %v123_v18 }
 0x1b5   :  { %v200_v20 = vpop.f32.mrb[0].mxu1 }
 0x1b6   :  { %v201_v21 = vadd.f32 %v200_v20, %v128_v19  ;;  %v237_v22 = vpop.f32.mrb[1].mxu1 }
 0x1b8   :  { %v219_v23 = vmul.f32 -1.442695, %v201_v21 }
 0x1ba   :  { %247 = vpow2.f32 %v219_v23 }
 0x1c4   :  { %v248_v24 = vpop.eup %247 }
 0x1c5   :  { %v207_v25 = vadd.f32 1.0, %v248_v24 }
 0x1c7   :  { %249 = vrcp.f32 %v207_v25 }
 0x1d1   :  { %v250_v26 = vpop.eup %249 }
 0x1d2   :  { %210 = vst [vmem:[%s314_s5] sm:$0xf] %v250_v26 }

</bundles_post_ra>
